<compile_context>
chip_gen: v5e
topology: v5e:2x2
jax: 0.10.0
libtpu: 0.0.40
codegen_flags: <defaults>
</compile_context>

<pallas_src>
import jax
import jax.numpy as jnp
from jax import lax
from jax.experimental import pallas as pl
from jax.experimental.pallas import tpu as pltpu

LANE = 128  # TPU vreg lane width


def _classifier_kernel(x_ref, w_ref, b_ref, o_ref):
    # x_ref: (TM, H) bf16   — activation tile
    # w_ref: (Lpad, H) bf16 — PyTorch [out, in] layout, zero-padded to Lpad
    # b_ref: (1, Lpad) f32  — zero-padded bias
    # o_ref: (TM, Lpad) f32 — lane-dense logits tile
    # TODO(synk): dropout is identity here (inference semantics); training-mode
    # dropout would draw a Bernoulli mask via pltpu.prng_* and rescale.
    acc = lax.dot_general(
        x_ref[...], w_ref[...],
        dimension_numbers=(((1,), (1,)), ((), ())),   # contract hidden dims (x @ W^T)
        preferred_element_type=jnp.float32,
    )
    o_ref[...] = (acc + b_ref[...]).astype(o_ref.dtype)


def _pick_tm(B):
    # Biggest batch tile that divides B; cap at 512 rows so a double-buffered
    # bf16 x tile + resident padded weight stays well inside v7x's 64 MiB VMEM
    # (v5e/v6e with 128 MiB have even more headroom).
    for tm in (512, 256, 128, 64, 32, 16, 8):
        if B >= tm and B % tm == 0:
            return tm
    return B


def classification_head(x, weight, bias, *, compute_dtype=jnp.bfloat16):
    """x: [B, H]; weight: [num_labels, H] (PyTorch layout); bias: [num_labels]."""
    B, H = x.shape
    L = weight.shape[0]
    Lpad = max(LANE, ((L + LANE - 1) // LANE) * LANE)

    # One-time parameter prep: zero-pad labels to a lane-dense width; no transpose.
    w_pad = jnp.zeros((Lpad, H), dtype=compute_dtype).at[:L, :].set(
        weight.astype(compute_dtype))
    b_pad = jnp.zeros((1, Lpad), dtype=jnp.float32).at[0, :L].set(
        bias.astype(jnp.float32))

    # In a real model the activations would already be bf16; cast here for the MXU.
    x_c = x.astype(compute_dtype)

    TM = _pick_tm(B)
    grid = (B // TM,)

    cost = pl.CostEstimate(
        flops=2 * B * H * Lpad,
        transcendentals=0,
        bytes_accessed=(x_c.size * x_c.dtype.itemsize
                        + w_pad.size * w_pad.dtype.itemsize
                        + b_pad.size * 4
                        + B * Lpad * 4),
    )

    out_pad = pl.pallas_call(
        _classifier_kernel,
        out_shape=jax.ShapeDtypeStruct((B, Lpad), jnp.float32),
        grid_spec=pltpu.PrefetchScalarGridSpec(
            num_scalar_prefetch=0,
            grid=grid,
            in_specs=[
                pl.BlockSpec((TM, H), lambda i: (i, 0)),       # x tile, pipelined over B
                pl.BlockSpec((Lpad, H), lambda i: (0, 0)),     # weight resident in VMEM
                pl.BlockSpec((1, Lpad), lambda i: (0, 0)),     # bias resident in VMEM
            ],
            out_specs=pl.BlockSpec((TM, Lpad), lambda i: (i, 0)),
        ),
        compiler_params=pltpu.CompilerParams(
            # Batch tiles are independent -> megacore sharding on v7x (2 TCs),
            # neutral on v5e/v6e.
            dimension_semantics=("parallel",),
        ),
        cost_estimate=cost,
    )(x_c, w_pad, b_pad)

    # Padded label columns are exactly zero; slice them away and restore dtype.
    return out_pad[:, :L].astype(x.dtype)


if __name__ == "__main__":
    batch = 8
    hidden_size = 32
    num_labels = 2

    key = jax.random.PRNGKey(0)
    kx, kw, kb = jax.random.split(key, 3)

    # Deterministic synthetic parameters (Linear(hidden_size, num_labels):
    # weight [num_labels, hidden], bias [num_labels]).
    x = jax.random.normal(kx, (batch, hidden_size), dtype=jnp.float32)
    weight = jax.random.normal(kw, (num_labels, hidden_size), dtype=jnp.float32) * 0.02
    bias = jax.random.normal(kb, (num_labels,), dtype=jnp.float32) * 0.02

    out = classification_head(x, weight, bias)
    out = jax.block_until_ready(out)

    # Reference in plain JAX (dropout is identity at inference). bf16 MXU inputs
    # with f32 accumulation -> compare with bf16-appropriate tolerance.
    ref = x @ weight.T + bias
    assert out.shape == (batch, num_labels)
    assert jnp.allclose(out, ref, atol=1e-2, rtol=1e-2), (out, ref)

    print("KERNEL_OK")
</pallas_src>

<mosaic_0001>
module attributes {stable_mosaic.version = 11 : i64} {
  func.func @_classifier_kernel(%arg0: i32, %arg1: memref<8x32xbf16, #tpu.memory_space<vmem>>, %arg2: memref<128x32xbf16, #tpu.memory_space<vmem>>, %arg3: memref<1x128xf32, #tpu.memory_space<vmem>>, %arg4: memref<8x128xf32, #tpu.memory_space<vmem>>) attributes {dimension_semantics = [#tpu.dimension_semantics<parallel>], iteration_bounds = array<i64: 1>, scalar_prefetch = 0 : i64, scratch_operands = 0 : i64, tpu.core_type = #tpu.core_type<tc>, window_params = [{transform_indices = @transform_0, window_bounds = array<i64: 8, 32>}, {pipeline_mode = #tpu.pipeline_mode<synchronous>, transform_indices = @transform_1, window_bounds = array<i64: 128, 32>}, {pipeline_mode = #tpu.pipeline_mode<synchronous>, transform_indices = @transform_2, window_bounds = array<i64: 1, 128>}, {transform_indices = @transform_3, window_bounds = array<i64: 8, 128>}]} {
    %c0 = arith.constant 0 : index
    %c0_0 = arith.constant 0 : index
    %0 = vector.load %arg1[%c0, %c0_0] : memref<8x32xbf16, #tpu.memory_space<vmem>>, vector<8x32xbf16>
    %c0_1 = arith.constant 0 : index
    %c0_2 = arith.constant 0 : index
    %1 = vector.load %arg2[%c0_1, %c0_2] : memref<128x32xbf16, #tpu.memory_space<vmem>>, vector<128x32xbf16>
    %cst = arith.constant dense<0.000000e+00> : vector<8x128xf32>
    %2 = tpu.matmul %0, %1, %cst {dimension_numbers = #tpu.dot_dimension_numbers<[1], [1], [0], [0], [0, 0, 1, 0], [], []>} : vector<8x32xbf16>, vector<128x32xbf16>, vector<8x128xf32> -> vector<8x128xf32>
    %c0_3 = arith.constant 0 : index
    %c0_4 = arith.constant 0 : index
    %3 = vector.load %arg3[%c0_3, %c0_4] : memref<1x128xf32, #tpu.memory_space<vmem>>, vector<1x128xf32>
    %4 = vector.broadcast %3 : vector<1x128xf32> to vector<8x128xf32>
    %5 = arith.addf %2, %4 : vector<8x128xf32>
    %c0_5 = arith.constant 0 : index
    %c0_6 = arith.constant 0 : index
    %6 = vector.load %arg4[%c0_5, %c0_6] : memref<8x128xf32, #tpu.memory_space<vmem>>, vector<8x128xf32>
    tpu.vector_store %arg4[%c0_5, %c0_6], %5 {strides = array<i32>} : memref<8x128xf32, #tpu.memory_space<vmem>>, vector<8x128xf32>,
    return
  }
  func.func @transform_0(%arg0: i32) -> (i32, i32) {
    %c0_i32 = arith.constant 0 : i32
    %c0_i32_0 = arith.constant 0 : i32
    return %arg0, %c0_i32 : i32, i32
  }
  func.func @transform_1(%arg0: i32) -> (i32, i32) {
    %c0_i32 = arith.constant 0 : i32
    %c0_i32_0 = arith.constant 0 : i32
    %c0_i32_1 = arith.constant 0 : i32
    return %c0_i32, %c0_i32_0 : i32, i32
  }
  func.func @transform_2(%arg0: i32) -> (i32, i32) {
    %c0_i32 = arith.constant 0 : i32
    %c0_i32_0 = arith.constant 0 : i32
    %c0_i32_1 = arith.constant 0 : i32
    return %c0_i32, %c0_i32_0 : i32, i32
  }
  func.func @transform_3(%arg0: i32) -> (i32, i32) {
    %c0_i32 = arith.constant 0 : i32
    %c0_i32_0 = arith.constant 0 : i32
    return %arg0, %c0_i32 : i32, i32
  }
}

</mosaic_0001>

<bundles_post_ra>
// kernel: tpu_custom_call.1
= control target key start
LH: loop header
LB: loop body
LE: loop exit
PB: predicated region body
PF: predicated region fallthrough
CT: control target
= control target key end

     0   :  { %vm76_vm0 = vcmask 261120   ;;  %s266_s0 = inlined_call_operand.vmem [shape: bf16[8,32], index: 0, kind: input, shape index: {}]   ;;  %s267_s1 = inlined_call_operand.vmem [shape: bf16[128,32], index: 1, kind: input, shape index: {}]   ;;  %s268_s2 = inlined_call_operand.vmem [shape: f32[1,128], index: 2, kind: input, shape index: {}]   ;;  %s269_s3 = inlined_call_operand.hbm [shape: f32[8,128], index: 3, kind: output, shape index: {}]  }
   0x1   :  { %v174_v0 = vld [vmem:[%s267_s1 + $0x38] sm:$0xff] }
   0x2   :  { %v102_v1 = vsel %vm76_vm0, %v174_v0, 0 }
   0x3   :  { %8 = vsyncpa [#allocation3], 0  ;;  %104 = vmatpush.bf16.xpose.msra.mxu0 %v102_v1  ;;  %v173_v2 = vld [vmem:[%s267_s1 + $0x30] sm:$0xff]  ;;  %v172_v4 = vld [vmem:[%s267_s1 + $0x28] sm:$0xff]  ;;  %s203_s5 = smov [#allocation2]   ;;  %s125_s9 = sshll.u32 %s269_s3, 4  ;;  %s126_s9 = int_to_ptr.hbm [resolvable:$true] %s125_s9 }
   0x4   :  { %v99_v3 = vsel %vm76_vm0, %v173_v2, 0  ;;  %v96_v5 = vsel %vm76_vm0, %v172_v4, 0  ;;  %v171_v6 = vld [vmem:[%s267_s1 + $0x20] sm:$0xff]  ;;  %v170_v8 = vld [vmem:[%s267_s1 + $0x18] sm:$0xff]  ;;  %v169_v10 = vld [vmem:[%s267_s1 + $0x10] sm:$0xff]  ;;  %s123_s6 = sshll.u32 %s203_s5, 4  ;;  %s124_s6 = int_to_ptr.vmem [resolvable:$true] %s123_s6 }
   0x5   :  { %v93_v7 = vsel %vm76_vm0, %v171_v6, 0  ;;  %v90_v9 = vsel %vm76_vm0, %v170_v8, 0  ;;  %v87_v11 = vsel %vm76_vm0, %v169_v10, 0  ;;  %v168_v12 = vld [vmem:[%s267_s1 + $0x8] sm:$0xff]  ;;  %v167_v14 = vld [vmem:[%s267_s1] sm:$0xff] }
   0x6   :  { %v84_v13 = vsel %vm76_vm0, %v168_v12, 0  ;;  %v81_v15 = vsel %vm76_vm0, %v167_v14, 0  ;;  %v15_v16 = vld [vmem:[%s266_s0] sm:$0xf] }
   0x7   :  { %v176_v17 = vld [vmem:[%s268_s2] ss:$0 sm:$0xff] }
   0xb   :  { %105 = vmatpush.bf16.xpose.msra.mxu0 %v99_v3 }
  0x13   :  { %106 = vmatpush.bf16.xpose.msra.mxu0 %v96_v5 }
  0x1b   :  { %107 = vmatpush.bf16.xpose.msra.mxu0 %v93_v7 }
  0x23   :  { %108 = vmatpush.bf16.xpose.msra.mxu0 %v90_v9 }
  0x2b   :  { %109 = vmatpush.bf16.xpose.msra.mxu0 %v87_v11 }
  0x33   :  { %110 = vmatpush.bf16.xpose.msra.mxu0 %v84_v13 }
  0x3b   :  { %111 = vmatpush.bf16.xpose.msra.mxu0 %v81_v15 }
  0x42   :  { %166 = vmatmul.msk.bf16.vlgmr.msra.gmra.mxu0 %vm76_vm0, %v15_v16 }
  0xbf   :  { %v113_v18 = vpop.f32.mrf.mxu0 }
  0xc0   :  { %v114_v19 = vadd.f32 %v176_v17, %v113_v18 }
  0xc2   :  { %117 = vst [vmem:[#allocation2] sm:$0xff] %v114_v19 }
  0xc3   :  { %128 = dma.vmem_to_hbm [thread:$0]  %s124_s6, 128, %s126_s9, [#allocation3]  }
  0xc7   :  { %v115_v20 = vpop.f32.mrf.mxu0 }
  0xc8   :  { %201 = dma.done.wait [#allocation3], 128  }
  0xc9   :  { %202 = vsyncadd [#allocation3], 4294967168 }
  0xca   :  { %133 = vsyncpa [#allocation3], 1 }

</bundles_post_ra>
